<compile_context>
chip_gen: v5e
topology: v5e:2x2
jax: 0.10.0
libtpu: 0.0.40
codegen_flags: <defaults>
</compile_context>

<pallas_src>
import functools
import math

import jax
import jax.numpy as jnp
from jax import lax
from jax.experimental import pallas as pl
from jax.experimental.pallas import tpu as pltpu


def _embeddings_kernel(x_ref, w_ref, pos_ref, o_ref):
    """One (batch, row-tile) grid step.

    x_ref  : (TILE, pack*K)   bf16  packed patch rows (MXU operand)
    w_ref  : (pack*K, pack*L) bf16  block-diagonal weight; constant block
                                    index -> DMA'd into VMEM exactly once.
    pos_ref: (TILE, pack*L)   f32   fused sin-position + conv-bias table
                                    (per-batch table, not tiled by B).
    o_ref  : (TILE, pack*L)   f32   lane-dense output tile.
    """
    acc = jnp.dot(x_ref[...], w_ref[...], preferred_element_type=jnp.float32)
    o_ref[...] = acc + pos_ref[...]  # f32 add, f32 store


def prepare_embeddings(img_size, patch_size, weight, bias,
                       *, compute_dtype=jnp.bfloat16):
    """One-time (module-init) parameter packing.

    Returns (w_packed, posbias_packed, pack):
      w_packed       (pack*K, pack*L) compute_dtype  block-diagonal kron(I,W)
      posbias_packed (N//pack, pack*L) float32       sin positions + conv bias
      pack           int  patches packed per 128-lane output row
    """
    ph, pw = patch_size
    L, C = weight.shape[0], weight.shape[1]
    Hp, Wp = img_size[0] // ph, img_size[1] // pw
    N = Hp * Wp
    K = C * ph * pw

    # Conv2d(kernel=stride=patch) == matmul with (K, L) weight on flattened
    # (C, ph, pw) patches.
    w_kl = weight.reshape(L, K).T.astype(jnp.float32)  # (K, L)

    # Sinusoidal positional table fused with the conv bias (both purely
    # additive) -- computed once in f32, no in-kernel transcendentals.
    i = jnp.arange(N, dtype=jnp.float32)[:, None]
    j = jnp.arange(L)
    expo = (2 * (j // 2)).astype(jnp.float32) / jnp.float32(L)
    angle = i / jnp.power(jnp.float32(10000.0), expo)
    angle = angle + jnp.where(j % 2 == 1, jnp.float32(math.pi / 2.0),
                              jnp.float32(0.0))
    posbias = jnp.sin(angle) + bias.astype(jnp.float32)[None, :]  # (N, L)

    # Lane packing: small-L workaround so output stores are full 128-lane vst.
    # At L % 128 == 0 (real ViT widths) pack == 1 and no kron is built.
    if L < 128 and 128 % L == 0 and N % (128 // L) == 0:
        pack = 128 // L
    else:
        pack = 1
    if pack > 1:
        w_packed = jnp.kron(jnp.eye(pack, dtype=jnp.float32), w_kl)
    else:
        w_packed = w_kl
    posbias_packed = posbias.reshape(N // pack, pack * L)

    return w_packed.astype(compute_dtype), posbias_packed, pack


def embeddings_forward(x, w_packed, posbias_packed, patch_size, length, pack,
                       *, row_tile=512, vmem_limit_bytes=48 * 1024 * 1024):
    """x: (B, C, H, W) float32 -> (B, N, length) float32."""
    B, C, H, W = x.shape
    ph, pw = patch_size
    Hp, Wp = H // ph, W // pw
    N = Hp * Wp
    K = C * ph * pw
    L = length
    Np = N // pack
    compute_dtype = w_packed.dtype

    # NCHW -> (B, Np, pack*K): row-major patch grid, (C, ph, pw) flatten per
    # patch.  Stays inside the jit; allow_input_fusion lets XLA fuse this into
    # the kernel's input side instead of materializing a transposed copy.
    patches = x.reshape(B, C, Hp, ph, Wp, pw)
    patches = jnp.transpose(patches, (0, 2, 4, 1, 3, 5))
    patches = patches.reshape(B, Np, pack * K).astype(compute_dtype)

    # Row tile (in packed rows): largest multiple-of-8 divisor of Np under the
    # budget, else the full per-batch extent (a full-dim block is always
    # legal).  At production sizes target >=256 rows so the MXU M dim is
    # saturated; 512 bf16 rows stays well under v7x's 64 MiB VMEM.
    tile = None
    cand = 8
    while cand <= Np and cand <= row_tile:
        if Np % cand == 0:
            tile = cand
        cand += 8
    if tile is None:
        tile = Np
    n_tiles = Np // tile

    idt = jnp.dtype(compute_dtype).itemsize
    flops = 2 * B * Np * (pack * K) * (pack * L)
    bytes_accessed = (B * Np * pack * K * idt            # patches
                      + (pack * K) * (pack * L) * idt    # weight (once)
                      + Np * pack * L * 4                # pos table (once)
                      + B * Np * pack * L * 4)           # output

    out = pl.pallas_call(
        _embeddings_kernel,
        out_shape=jax.ShapeDtypeStruct((B, Np, pack * L), jnp.float32),
        grid=(B, n_tiles),
        in_specs=[
            # One (batch, row-tile) block of packed patch rows.
            pl.BlockSpec((None, tile, pack * K), lambda b, t: (b, t, 0)),
            # Weight: constant block index -> fetched once, resident in VMEM.
            pl.BlockSpec((pack * K, pack * L), lambda b, t: (0, 0)),
            # Positional/bias table: indexed by row-tile only (no B scaling).
            pl.BlockSpec((tile, pack * L), lambda b, t: (t, 0)),
        ],
        out_specs=pl.BlockSpec((None, tile, pack * L), lambda b, t: (b, t, 0)),
        compiler_params=pltpu.CompilerParams(
            # No reduction grid axis -> both axes parallel (fills both
            # TensorCores on v7x; harmless on v5e/v6e).
            dimension_semantics=("parallel", "parallel"),
            # Allow XLA to fuse the NCHW->patch transpose into input 0.
            allow_input_fusion=[True, False, False],
            vmem_limit_bytes=vmem_limit_bytes,
        ),
        cost_estimate=pl.CostEstimate(
            flops=flops, transcendentals=0, bytes_accessed=bytes_accessed),
    )(patches, w_packed, posbias_packed)

    return out.reshape(B, N, L)  # free row-major view


def reference_forward(x, weight, bias, patch_size):
    """Plain-JAX f32 reference matching the PyTorch forward."""
    B, C, H, W = x.shape
    ph, pw = patch_size
    L = weight.shape[0]
    Hp, Wp = H // ph, W // pw
    N = Hp * Wp

    y = lax.conv_general_dilated(
        x, weight, window_strides=(ph, pw), padding="VALID",
        dimension_numbers=("NCHW", "OIHW", "NCHW"))
    y = y + bias.reshape(1, L, 1, 1)
    y = y.reshape(B, L, N).transpose(0, 2, 1)  # (B, N, L)

    i = jnp.arange(N, dtype=jnp.float32)[:, None]
    j = jnp.arange(L)
    expo = (2 * (j // 2)).astype(jnp.float32) / L
    angle = i / jnp.power(10000.0, expo)
    angle = angle + jnp.where(j % 2 == 1, math.pi / 2.0, 0.0)
    pos = jnp.sin(angle)[None]  # (1, N, L)
    return y + pos


if __name__ == "__main__":
    # Module config: img_size=(16,16), patch_size=(4,4), channel=4, length=32
    img_size = (16, 16)
    patch_size = (4, 4)
    channel = 4
    length = 32
    B = 2

    key = jax.random.PRNGKey(0)
    kx, kw, kb = jax.random.split(key, 3)

    x = jax.random.normal(kx, (B, channel, *img_size), dtype=jnp.float32)

    # Conv2d(channel -> length, kernel=stride=patch) parameters.
    fan_in = channel * patch_size[0] * patch_size[1]
    weight = jax.random.normal(
        kw, (length, channel, patch_size[0], patch_size[1]),
        dtype=jnp.float32) * math.sqrt(2.0 / fan_in)        # kaiming_normal_
    bound = 1.0 / math.sqrt(fan_in)
    bias = jax.random.uniform(
        kb, (length,), minval=-bound, maxval=bound, dtype=jnp.float32)

    # One-time packing (module init), then a jitted forward.
    w_packed, posbias_packed, pack = prepare_embeddings(
        img_size, patch_size, weight, bias)

    fwd = jax.jit(functools.partial(
        embeddings_forward, w_packed=w_packed, posbias_packed=posbias_packed,
        patch_size=patch_size, length=length, pack=pack))

    out = jax.block_until_ready(fwd(x))

    N = (img_size[0] // patch_size[0]) * (img_size[1] // patch_size[1])
    assert out.shape == (B, N, length)

    # Tight check vs a reference using the same bf16-quantized operands
    # (kernel accumulates in f32 on the MXU).
    xq = x.astype(jnp.bfloat16).astype(jnp.float32)
    wq = weight.astype(jnp.bfloat16).astype(jnp.float32)
    ref_q = reference_forward(xq, wq, bias, patch_size)
    assert jnp.allclose(out, ref_q, atol=1e-4, rtol=1e-4)

    # Sanity check vs the full-f32 PyTorch-equivalent reference (difference is
    # only bf16 operand rounding).
    ref = reference_forward(x, weight, bias, patch_size)
    assert jnp.allclose(out, ref, atol=5e-2, rtol=5e-2)

    print("KERNEL_OK")
</pallas_src>

<mosaic_0001>
module attributes {stable_mosaic.version = 11 : i64} {
  func.func @_embeddings_kernel(%arg0: i32, %arg1: i32, %arg2: memref<1x4x256xbf16, #tpu.memory_space<vmem>>, %arg3: memref<256x128xbf16, #tpu.memory_space<vmem>>, %arg4: memref<4x128xf32, #tpu.memory_space<vmem>>, %arg5: memref<1x4x128xf32, #tpu.memory_space<vmem>>) attributes {dimension_semantics = [#tpu.dimension_semantics<parallel>, #tpu.dimension_semantics<parallel>], iteration_bounds = array<i64: 2, 1>, scalar_prefetch = 0 : i64, scratch_operands = 0 : i64, tpu.core_type = #tpu.core_type<tc>, window_params = [{transform_indices = @transform_0, window_bounds = array<i64: 1, 4, 256>}, {pipeline_mode = #tpu.pipeline_mode<synchronous>, transform_indices = @transform_1, window_bounds = array<i64: 256, 128>}, {transform_indices = @transform_2, window_bounds = array<i64: 4, 128>}, {transform_indices = @transform_3, window_bounds = array<i64: 1, 4, 128>}]} {
    %c0 = arith.constant 0 : index
    %c0_0 = arith.constant 0 : index
    %c0_1 = arith.constant 0 : index
    %0 = vector.load %arg2[%c0, %c0_0, %c0_1] : memref<1x4x256xbf16, #tpu.memory_space<vmem>>, vector<1x4x256xbf16>
    %1 = vector.shape_cast %0 : vector<1x4x256xbf16> to vector<4x256xbf16>
    %c0_2 = arith.constant 0 : index
    %c0_3 = arith.constant 0 : index
    %2 = vector.load %arg3[%c0_2, %c0_3] : memref<256x128xbf16, #tpu.memory_space<vmem>>, vector<256x128xbf16>
    %cst = arith.constant dense<0.000000e+00> : vector<4x128xf32>
    %3 = tpu.matmul %1, %2, %cst {dimension_numbers = #tpu.dot_dimension_numbers<[1], [0], [0], [1], [0, 0, 1, 1], [], []>} : vector<4x256xbf16>, vector<256x128xbf16>, vector<4x128xf32> -> vector<4x128xf32>
    %c0_4 = arith.constant 0 : index
    %c0_5 = arith.constant 0 : index
    %4 = vector.load %arg4[%c0_4, %c0_5] : memref<4x128xf32, #tpu.memory_space<vmem>>, vector<4x128xf32>
    %5 = arith.addf %3, %4 : vector<4x128xf32>
    %c0_6 = arith.constant 0 : index
    %c0_7 = arith.constant 0 : index
    %c0_8 = arith.constant 0 : index
    %6 = vector.load %arg5[%c0_6, %c0_7, %c0_8] : memref<1x4x128xf32, #tpu.memory_space<vmem>>, vector<1x4x128xf32>
    %7 = vector.shape_cast %6 : vector<1x4x128xf32> to vector<4x128xf32>
    %8 = vector.shape_cast %5 : vector<4x128xf32> to vector<1x4x128xf32>
    tpu.vector_store %arg5[%c0_6, %c0_7, %c0_8], %8 {strides = array<i32>} : memref<1x4x128xf32, #tpu.memory_space<vmem>>, vector<1x4x128xf32>,
    return
  }
  func.func @transform_0(%arg0: i32, %arg1: i32) -> (i32, i32, i32) {
    %c0_i32 = arith.constant 0 : i32
    %c0_i32_0 = arith.constant 0 : i32
    return %arg0, %arg1, %c0_i32 : i32, i32, i32
  }
  func.func @transform_1(%arg0: i32, %arg1: i32) -> (i32, i32) {
    %c0_i32 = arith.constant 0 : i32
    %c0_i32_0 = arith.constant 0 : i32
    %c0_i32_1 = arith.constant 0 : i32
    return %c0_i32, %c0_i32_0 : i32, i32
  }
  func.func @transform_2(%arg0: i32, %arg1: i32) -> (i32, i32) {
    %c0_i32 = arith.constant 0 : i32
    %c0_i32_0 = arith.constant 0 : i32
    return %arg1, %c0_i32 : i32, i32
  }
  func.func @transform_3(%arg0: i32, %arg1: i32) -> (i32, i32, i32) {
    %c0_i32 = arith.constant 0 : i32
    %c0_i32_0 = arith.constant 0 : i32
    return %arg0, %arg1, %c0_i32 : i32, i32, i32
  }
}

</mosaic_0001>

<bundles_post_ra>
// kernel: embeddings_forward.1
= control target key start
LH: loop header
LB: loop body
LE: loop exit
PB: predicated region body
PF: predicated region fallthrough
CT: control target
= control target key end

     0   :  { %s639_s12 = smov 0   ;;  %s641_s13 = smov 0   ;;  %s730_s0 = inlined_call_operand.vmem [shape: bf16[2,4,256], index: 0, kind: input, shape index: {}]   ;;  %s731_s1 = inlined_call_operand.vmem [shape: bf16[256,128], index: 1, kind: input, shape index: {}]   ;;  %s732_s2 = inlined_call_operand.vmem [shape: f32[4,128], index: 2, kind: input, shape index: {}]   ;;  %s733_s3 = inlined_call_operand.vmem [shape: f32[2,4,128], index: 3, kind: output, shape index: {}]  }
   0x1   :  { %s643_s14 = smov 0  }
   0x2 LB: > { %s25_s15 = sadd.s32 1, %s613_s13  ;;  %p484_p0 = scmp.ge.s32.totalorder %s617_s14, 1  ;;  %s617_s14 = sphi %s643_s14, %s13_s14   ;;  %s613_s13 = sphi %s641_s13, %s735_s13   ;;  %s609_s12 = sphi %s639_s12, %s734_s12  }
   0x3   : > { %p27_p1 = scmp.ge.s32.totalorder %s25_s15, 2  ;;  %p166_p2 = scmp.lt.s32.totalorder %s617_s14, 3 }
   0x5   : > { %s737_s15 = smov (%p27_p1, %s25_s15), 0  ;;  %p167_p3 = pnand %p484_p0, %p166_p2 }
   0x6   : > { %p200_p4 = scmp.lt.s32.totalorder (!%p167_p3), %s609_s12, 1 }
   0x7   : > { %170 = sbr.rel (%p167_p3) target bundleno = 179 (0xb3), region = 32 }
   0xc   : > { %v562_v0 = vld [vmem:[%s731_s1 + $0x38] sm:$0xff]  ;;  %v561_v2 = vld [vmem:[%s731_s1 + $0x30] sm:$0xff]  ;;  %s739_s12 = smov (!%p200_p4, %s609_s12), 1  ;;  %v560_v4 = vld [vmem:[%s731_s1 + $0x28] sm:$0xff] }
   0xd   : > { %v570_v1 = vld [vmem:[%s731_s1 + $0x78] sm:$0xff]  ;;  %356 = vmatpush.bf16.msra.mxu0 %v562_v0  ;;  %v569_v3 = vld [vmem:[%s731_s1 + $0x70] sm:$0xff]  ;;  %s554_s24 = sshll.u32 %s739_s12, 2  ;;  %v568_v5 = vld [vmem:[%s731_s1 + $0x68] sm:$0xff] }
   0xe   : > { %369 = vmatpush.bf16.msra.mxu1 %v570_v1  ;;  %s208_s27 = scalar_lea.vmem %s730_s0, %s554_s24  ;;  %v559_v7 = vld [vmem:[%s731_s1 + $0x20] sm:$0xff]  ;;  %v558_v9 = vld [vmem:[%s731_s1 + $0x18] sm:$0xff]  ;;  %v557_v11 = vld [vmem:[%s731_s1 + $0x10] sm:$0xff]  ;;  %s219_s7 = scalar_lea.vmem %s733_s3, %s554_s24 }
   0xf   : > { %v220_v6 = vld [vmem:[%s208_s27] sm:$0xf]  ;;  %v566_v10 = vld [vmem:[%s731_s1 + $0x58] sm:$0xff]  ;;  %v565_v12 = vld [vmem:[%s731_s1 + $0x50] sm:$0xff] }
  0x10   : > { %255 = vst [vmem:[#allocation1] ss:$4 sm:$0xff] %v220_v6  ;;  %v567_v8 = vld [vmem:[%s731_s1 + $0x60] sm:$0xff]  ;;  %v556_v13 = vld [vmem:[%s731_s1 + $0x8] sm:$0xff] }
  0x11   : > { %357 = vmatpush.bf16.msra.mxu0 %v561_v2  ;;  %v564_v14 = vld [vmem:[%s731_s1 + $0x48] sm:$0xff]  ;;  %v555_v15 = vld [vmem:[%s731_s1] sm:$0xff] }
  0x12   : > { %370 = vmatpush.bf16.msra.mxu1 %v569_v3  ;;  %v563_v16 = vld [vmem:[%s731_s1 + $0x40] sm:$0xff] }
  0x13   : > { %v253_v19 = vld [vmem:[%s732_s2] sm:$0xf] }
  0x15   : > { %358 = vmatpush.bf16.msra.mxu0 %v560_v4 }
  0x16   : > { %371 = vmatpush.bf16.msra.mxu1 %v568_v5 }
  0x17   : > { %v256_v17 = vld.sshfl [vmem:[#allocation1] sm:$0xff pattern:$0x73625140]  ;;  %v257_v18 = vld.sshfl [vmem:[#allocation1 + $0x8] sm:$0xff pattern:$0x73625140] }
  0x19   : > { %359 = vmatpush.bf16.msra.mxu0 %v559_v7 }
  0x1a   : > { %372 = vmatpush.bf16.msra.mxu1 %v567_v8 }
  0x1d   : > { %360 = vmatpush.bf16.msra.mxu0 %v558_v9 }
  0x1e   : > { %373 = vmatpush.bf16.msra.mxu1 %v566_v10 }
  0x21   : > { %361 = vmatpush.bf16.msra.mxu0 %v557_v11 }
  0x22   : > { %374 = vmatpush.bf16.msra.mxu1 %v565_v12 }
  0x25   : > { %362 = vmatpush.bf16.msra.mxu0 %v556_v13 }
  0x26   : > { %375 = vmatpush.bf16.msra.mxu1 %v564_v14 }
  0x29   : > { %363 = vmatpush.bf16.msra.mxu0 %v555_v15 }
  0x2a   : > { %376 = vmatpush.bf16.msra.mxu1 %v563_v16 }
  0x2c   : > { %364 = vmatmul.bf16.vlgmr.msra.gmra.mxu0 %v256_v17 }
  0x2d   : > { %377 = vmatmul.bf16.vlgmr.msra.gmra.mxu1 %v257_v18 }
  0xa9   : > { %v365_v20 = vpop.f32.mrf.mxu0 }
  0xaa   : > { %v378_v21 = vpop.f32.mrf.mxu1  ;;  %v366_v22 = vadd.f32 %v365_v20, %v253_v19 }
  0xac   : > { %v379_v23 = vadd.f32 %v378_v21, %v366_v22 }
  0xae   : > { %382 = vst [vmem:[%s219_s7] sm:$0xf] %v379_v23 }
  0xb1   : > { %v367_v24 = vpop.f32.mrf.mxu0 }
  0xb2   : > { %v380_v25 = vpop.f32.mrf.mxu1 }
  0xb3 PF: > { %s13_s14 = sadd.s32 1, %s617_s14   ;;  %s734_s12 = smov %s613_s13 }
  0xb4   : > { %p10_p5 = scmp.ge.s32.totalorder %s13_s14, 4   ;;  %s735_s13 = smov %s737_s15 }
  0xb6   :  { %12 = sbr.rel (!%p10_p5) target bundleno = 2 (0x2), region = 65 }

</bundles_post_ra>
